<compile_context>
chip_gen: v5e
topology: v5e:2x2
jax: 0.10.0
libtpu: 0.0.40
codegen_flags: <defaults>
</compile_context>

<pallas_src>
import functools

import jax
import jax.numpy as jnp
from jax.experimental import pallas as pl
from jax.experimental.pallas import tpu as pltpu


# -----------------------------------------------------------------------------
# Dropout keep-mask: deterministic integer hash. int32-only ops (wrapping mul,
# xor, logical shifts) so it lowers identically in Mosaic and interpret mode.
# -----------------------------------------------------------------------------
_C1 = 0x7FEB352D                   #  2146121773
_C2 = 0x846CA68B - (1 << 32)       # -2073377141 (same bit pattern as 0x846CA68B)
_GOLD = 0x9E3779B1 - (1 << 32)     # -1640531535 (golden-ratio constant)
_SALT = 0x27D4EB2F


def _srl(x, n):
    """Logical right shift for int32 arrays (works inside and outside kernels)."""
    return jax.lax.shift_right_logical(x, jnp.full(x.shape, n, x.dtype))


def _mix32(x):
    """32-bit avalanche mix (murmur3-finalizer style), wrapping int32 arithmetic."""
    x = x ^ _srl(x, 16)
    x = x * jnp.int32(_C1)
    x = x ^ _srl(x, 15)
    x = x * jnp.int32(_C2)
    x = x ^ _srl(x, 16)
    return x


def dropout_keep_mask(n_rows, n_cols, seed):
    """Pure-JAX reference of the in-kernel Bernoulli(0.5) keep mask."""
    row = jnp.arange(n_rows, dtype=jnp.int32)[:, None]
    col = jnp.arange(n_cols, dtype=jnp.int32)[None, :]
    idx = row * jnp.int32(n_cols) + col
    key = jnp.asarray(seed, jnp.int32) * jnp.int32(_GOLD) + jnp.int32(_SALT)
    bits = _mix32(idx ^ key)
    return _srl(bits, 31) == 1


# -----------------------------------------------------------------------------
# Kernel: one (batch-tile i, hidden-tile j) grid step of fc1 -> ReLU -> Dropout -> fc2.
# fc2 is accumulated over the hidden axis in an f32 VMEM scratch (P3 pattern).
# -----------------------------------------------------------------------------
def _mlp_head_kernel(seed_ref, x_ref, w1_ref, b1_ref, w2_ref, b2_ref, o_ref,
                     acc_ref, *, training, d_h_total):
    j = pl.program_id(1)

    @pl.when(j == 0)
    def _init():
        acc_ref[...] = jnp.zeros_like(acc_ref)

    # fc1 on the MXU with f32 accumulation; bias + ReLU in f32.
    h = jnp.dot(x_ref[...], w1_ref[...], preferred_element_type=jnp.float32)
    h = h + b1_ref[...].astype(jnp.float32)
    h = jnp.maximum(h, 0.0)

    if training:
        # Inverted dropout, p = 0.5: keep-bit = high bit of a hash of the global
        # (row, col) position mixed with the seed. Single select, no extra mul.
        bb, bh = h.shape
        row = jax.lax.broadcasted_iota(jnp.int32, (bb, bh), 0) + pl.program_id(0) * bb
        col = jax.lax.broadcasted_iota(jnp.int32, (bb, bh), 1) + j * bh
        key = seed_ref[0] * jnp.int32(_GOLD) + jnp.int32(_SALT)
        bits = _mix32((row * jnp.int32(d_h_total) + col) ^ key)
        keep = _srl(bits, 31) == 1
        h = jnp.where(keep, h + h, jnp.float32(0.0))

    # fc2 partial product for this hidden tile. (If compute dtype is bf16, the f32
    # activations are rounded to bf16 before the MXU — documented mixed precision.)
    acc_ref[...] += jnp.dot(h.astype(w2_ref.dtype), w2_ref[...],
                            preferred_element_type=jnp.float32)

    @pl.when(j == pl.num_programs(1) - 1)
    def _finalize():
        o_ref[...] = (acc_ref[...] + b2_ref[...].astype(jnp.float32)).astype(o_ref.dtype)


# -----------------------------------------------------------------------------
# Wrapper: tiling, padding, specs, VMEM budget.
# -----------------------------------------------------------------------------
def _round_up(n, m):
    return ((n + m - 1) // m) * m


def _pad_to(a, shape):
    pads = [(0, t - s) for s, t in zip(a.shape, shape)]
    if any(p[1] for p in pads):
        a = jnp.pad(a, pads)
    return a


@functools.partial(
    jax.jit, static_argnames=("block_b", "block_h", "training", "compute_dtype"))
def mlp_head(x, w1, b1, w2, b2, *, block_b=None, block_h=None, training=False,
             seed=0, compute_dtype=None):
    """Fused MLP head.

    x: [B, D_in]; w1: [D_in, D_h]; b1: [D_h]; w2: [D_h, D_out]; b2: [D_out]
    -> [B, D_out] in x.dtype.

    compute_dtype: dtype fed to the MXU (use jnp.bfloat16 on v6e/v7x). Bias add,
    ReLU and dropout always run in f32; both matmuls accumulate in f32.
    """
    B, D_in = x.shape
    D_h = w1.shape[1]
    D_out = w2.shape[1]
    out_dtype = x.dtype
    if compute_dtype is None:
        compute_dtype = x.dtype
    c_bytes = jnp.dtype(compute_dtype).itemsize

    # ---- tile selection -------------------------------------------------------
    # Batch tile: large M for the MXU (cap 256 keeps >=2 parallel steps for big B,
    # so both v7x TensorCores stay busy), multiple of 8 for the sublane tiling.
    if block_b is None:
        block_b = min(256, _round_up(B, 8))
    block_b = max(8, _round_up(block_b, 8))
    B_pad = _round_up(B, block_b)

    # Hidden tile: keep whole D_h resident unless the weights would strain VMEM
    # (v7x: 64 MiB physical); then tile D_h (multiple of 128) and accumulate fc2.
    if block_h is None:
        weight_bytes = (D_in * D_h + D_h * D_out) * c_bytes
        block_h = D_h if 2 * weight_bytes <= 24 * 1024 * 1024 else 512
    if block_h >= D_h:
        block_h = D_h
    else:
        block_h = max(128, (block_h // 128) * 128)
    D_h_pad = _round_up(D_h, block_h)

    grid = (B_pad // block_b, D_h_pad // block_h)

    # ---- operand preparation (cast to MXU dtype, zero-pad) ----------------------
    xp = _pad_to(x.astype(compute_dtype), (B_pad, D_in))
    w1p = _pad_to(w1.astype(compute_dtype), (D_in, D_h_pad))
    w2p = _pad_to(w2.astype(compute_dtype), (D_h_pad, D_out))
    b1p = _pad_to(b1.astype(jnp.float32).reshape(1, D_h), (1, D_h_pad))
    b2p = b2.astype(jnp.float32).reshape(1, D_out)
    seed_arr = jnp.asarray(seed, dtype=jnp.int32).reshape(1)

    grid_spec = pltpu.PrefetchScalarGridSpec(
        num_scalar_prefetch=1,                       # dropout seed -> SMEM
        grid=grid,
        in_specs=[
            pl.BlockSpec((block_b, D_in), lambda i, j, s: (i, 0)),
            pl.BlockSpec((D_in, block_h), lambda i, j, s: (0, j)),
            pl.BlockSpec((1, block_h), lambda i, j, s: (0, j)),
            pl.BlockSpec((block_h, D_out), lambda i, j, s: (j, 0)),
            pl.BlockSpec((1, D_out), lambda i, j, s: (0, 0)),
        ],
        out_specs=pl.BlockSpec((block_b, D_out), lambda i, j, s: (i, 0)),
        scratch_shapes=[pltpu.VMEM((block_b, D_out), jnp.float32)],
    )

    # ---- VMEM budget (double-buffered tiles + accumulator + temporaries) --------
    blk_bytes = (
        2 * block_b * D_in * c_bytes              # x tile
        + 2 * D_in * block_h * c_bytes            # w1 tile
        + 2 * block_h * D_out * c_bytes           # w2 tile
        + 2 * (block_h + D_out) * 4               # bias tiles (f32)
        + 2 * block_b * D_out * jnp.dtype(out_dtype).itemsize   # out tile
        + block_b * D_out * 4                     # f32 accumulator scratch
        + 4 * block_b * block_h * 4               # h / dropout temporaries headroom
    )
    vmem_limit = int(min(64 * 1024 * 1024,
                         max(32 * 1024 * 1024, blk_bytes + 8 * 1024 * 1024)))

    cost = pl.CostEstimate(
        flops=2 * B * (D_in * D_h + D_h * D_out),
        transcendentals=0,
        bytes_accessed=int(xp.size * c_bytes + w1p.size * c_bytes + w2p.size * c_bytes
                           + b1p.size * 4 + b2p.size * 4
                           + B_pad * D_out * jnp.dtype(out_dtype).itemsize),
    )

    kernel = functools.partial(_mlp_head_kernel, training=training, d_h_total=D_h)
    out = pl.pallas_call(
        kernel,
        out_shape=jax.ShapeDtypeStruct((B_pad, D_out), out_dtype),
        grid_spec=grid_spec,
        compiler_params=pltpu.CompilerParams(
            dimension_semantics=("parallel", "arbitrary"),
            vmem_limit_bytes=vmem_limit,
        ),
        cost_estimate=cost,
    )(seed_arr, xp, w1p, b1p, w2p, b2p)
    return out[:B]


def init_params(key, input_dim, hidden_dim, output_dim, dtype=jnp.float32):
    """nn.Linear-style uniform(-1/sqrt(fan_in), 1/sqrt(fan_in)) init.
    Weights stored pre-transposed as [in, out]."""
    k1, k2, k3, k4 = jax.random.split(key, 4)
    lim1 = 1.0 / (input_dim ** 0.5)
    lim2 = 1.0 / (hidden_dim ** 0.5)
    w1 = jax.random.uniform(k1, (input_dim, hidden_dim), dtype, -lim1, lim1)
    b1 = jax.random.uniform(k2, (hidden_dim,), dtype, -lim1, lim1)
    w2 = jax.random.uniform(k3, (hidden_dim, output_dim), dtype, -lim2, lim2)
    b2 = jax.random.uniform(k4, (output_dim,), dtype, -lim2, lim2)
    return w1, b1, w2, b2


if __name__ == "__main__":
    key = jax.random.PRNGKey(0)
    kx, kp = jax.random.split(key)

    batch, input_dim, hidden_dim, output_dim = 8, 32, 64, 16
    x = jax.random.normal(kx, (batch, input_dim), jnp.float32)
    w1, b1, w2, b2 = init_params(kp, input_dim, hidden_dim, output_dim)

    # High-precision pure-JAX references (avoid TPU's default low-precision f32 dot).
    def _hi_dot(a, b):
        return jnp.dot(a, b, precision="highest")

    # --- eval mode (Dropout(0.5) is identity), f32 end-to-end -------------------
    out = jax.block_until_ready(mlp_head(x, w1, b1, w2, b2))
    ref = _hi_dot(jnp.maximum(_hi_dot(x, w1) + b1, 0.0), w2) + b2
    assert out.shape == (batch, output_dim)
    assert jnp.allclose(out, ref, atol=1e-3, rtol=1e-3), "eval mismatch vs reference"

    # --- training mode: kernel dropout must match the reference hash mask -------
    seed = 1234
    out_tr = jax.block_until_ready(
        mlp_head(x, w1, b1, w2, b2, training=True, seed=seed))
    keep = dropout_keep_mask(batch, hidden_dim, seed)
    h_ref = jnp.maximum(_hi_dot(x, w1) + b1, 0.0)
    h_ref = jnp.where(keep, h_ref * 2.0, 0.0)          # inverted dropout, p = 0.5
    ref_tr = _hi_dot(h_ref, w2) + b2
    assert out_tr.shape == (batch, output_dim)
    assert jnp.allclose(out_tr, ref_tr, atol=1e-3, rtol=1e-3), "train mismatch vs reference"
    assert bool(jnp.all(jnp.isfinite(out_tr)))

    # --- bf16 MXU inputs (v6e/v7x fast path), f32 accumulation -------------------
    out_bf16 = jax.block_until_ready(
        mlp_head(x, w1, b1, w2, b2, compute_dtype=jnp.bfloat16))
    assert jnp.allclose(out_bf16, ref, atol=0.08, rtol=0.08), "bf16 mismatch vs reference"

    print("KERNEL_OK")
</pallas_src>

<mosaic_0001>
module attributes {stable_mosaic.version = 11 : i64} {
  func.func @_mlp_head_kernel(%arg0: i32, %arg1: i32, %arg2: memref<1xi32, #tpu.memory_space<smem>>, %arg3: memref<8x32xf32, #tpu.memory_space<vmem>>, %arg4: memref<32x64xf32, #tpu.memory_space<vmem>>, %arg5: memref<1x64xf32, #tpu.memory_space<vmem>>, %arg6: memref<64x16xf32, #tpu.memory_space<vmem>>, %arg7: memref<1x16xf32, #tpu.memory_space<vmem>>, %arg8: memref<8x16xf32, #tpu.memory_space<vmem>>, %arg9: memref<8x16xf32, #tpu.memory_space<vmem>>) attributes {dimension_semantics = [#tpu.dimension_semantics<parallel>, #tpu.dimension_semantics<arbitrary>], iteration_bounds = array<i64: 1, 1>, scalar_prefetch = 1 : i64, scratch_operands = 1 : i64, tpu.core_type = #tpu.core_type<tc>, window_params = [{transform_indices = @transform_0, window_bounds = array<i64: 8, 32>}, {transform_indices = @transform_1, window_bounds = array<i64: 32, 64>}, {transform_indices = @transform_2, window_bounds = array<i64: 1, 64>}, {transform_indices = @transform_3, window_bounds = array<i64: 64, 16>}, {pipeline_mode = #tpu.pipeline_mode<synchronous>, transform_indices = @transform_4, window_bounds = array<i64: 1, 16>}, {transform_indices = @transform_5, window_bounds = array<i64: 8, 16>}]} {
    %c0_i32 = arith.constant 0 : i32
    %0 = arith.cmpi eq, %arg1, %c0_i32 : i32
    %1 = arith.extui %0 : i1 to i32
    %c0_i32_0 = arith.constant 0 : i32
    %2 = arith.cmpi ne, %1, %c0_i32_0 : i32
    scf.if %2 {
      %cst_16 = arith.constant 0.000000e+00 : f32
      %19 = vector.broadcast %cst_16 : f32 to vector<8x16xf32>
      %c0_17 = arith.constant 0 : index
      %c0_18 = arith.constant 0 : index
      %20 = vector.load %arg9[%c0_17, %c0_18] : memref<8x16xf32, #tpu.memory_space<vmem>>, vector<8x16xf32>
      tpu.vector_store %arg9[%c0_17, %c0_18], %19 {strides = array<i32>} : memref<8x16xf32, #tpu.memory_space<vmem>>, vector<8x16xf32>,
    } else {
    }
    %c0 = arith.constant 0 : index
    %c0_1 = arith.constant 0 : index
    %3 = vector.load %arg3[%c0, %c0_1] : memref<8x32xf32, #tpu.memory_space<vmem>>, vector<8x32xf32>
    %c0_2 = arith.constant 0 : index
    %c0_3 = arith.constant 0 : index
    %4 = vector.load %arg4[%c0_2, %c0_3] : memref<32x64xf32, #tpu.memory_space<vmem>>, vector<32x64xf32>
    %cst = arith.constant dense<0.000000e+00> : vector<8x64xf32>
    %5 = tpu.matmul %3, %4, %cst {dimension_numbers = #tpu.dot_dimension_numbers<[1], [0], [0], [1], [0, 0, 1, 1], [], []>} : vector<8x32xf32>, vector<32x64xf32>, vector<8x64xf32> -> vector<8x64xf32>
    %c0_4 = arith.constant 0 : index
    %c0_5 = arith.constant 0 : index
    %6 = vector.load %arg5[%c0_4, %c0_5] : memref<1x64xf32, #tpu.memory_space<vmem>>, vector<1x64xf32>
    %7 = vector.broadcast %6 : vector<1x64xf32> to vector<8x64xf32>
    %8 = arith.addf %5, %7 : vector<8x64xf32>
    %cst_6 = arith.constant 0.000000e+00 : f32
    %9 = vector.broadcast %cst_6 : f32 to vector<8x64xf32>
    %10 = arith.maximumf %8, %9 : vector<8x64xf32>
    %c0_7 = arith.constant 0 : index
    %c0_8 = arith.constant 0 : index
    %11 = vector.load %arg9[%c0_7, %c0_8] : memref<8x16xf32, #tpu.memory_space<vmem>>, vector<8x16xf32>
    %c0_9 = arith.constant 0 : index
    %c0_10 = arith.constant 0 : index
    %12 = vector.load %arg6[%c0_9, %c0_10] : memref<64x16xf32, #tpu.memory_space<vmem>>, vector<64x16xf32>
    %cst_11 = arith.constant dense<0.000000e+00> : vector<8x16xf32>
    %13 = tpu.matmul %10, %12, %cst_11 {dimension_numbers = #tpu.dot_dimension_numbers<[1], [0], [0], [1], [0, 0, 1, 1], [], []>} : vector<8x64xf32>, vector<64x16xf32>, vector<8x16xf32> -> vector<8x16xf32>
    %14 = arith.addf %11, %13 : vector<8x16xf32>
    %c0_12 = arith.constant 0 : index
    %c0_13 = arith.constant 0 : index
    %15 = vector.load %arg9[%c0_12, %c0_13] : memref<8x16xf32, #tpu.memory_space<vmem>>, vector<8x16xf32>
    tpu.vector_store %arg9[%c0_12, %c0_13], %14 {strides = array<i32>} : memref<8x16xf32, #tpu.memory_space<vmem>>, vector<8x16xf32>,
    %c0_i32_14 = arith.constant 0 : i32
    %16 = arith.cmpi eq, %arg1, %c0_i32_14 : i32
    %17 = arith.extui %16 : i1 to i32
    %c0_i32_15 = arith.constant 0 : i32
    %18 = arith.cmpi ne, %17, %c0_i32_15 : i32
    scf.if %18 {
      %c0_16 = arith.constant 0 : index
      %c0_17 = arith.constant 0 : index
      %19 = vector.load %arg9[%c0_16, %c0_17] : memref<8x16xf32, #tpu.memory_space<vmem>>, vector<8x16xf32>
      %c0_18 = arith.constant 0 : index
      %c0_19 = arith.constant 0 : index
      %20 = vector.load %arg7[%c0_18, %c0_19] : memref<1x16xf32, #tpu.memory_space<vmem>>, vector<1x16xf32>
      %21 = vector.broadcast %20 : vector<1x16xf32> to vector<8x16xf32>
      %22 = arith.addf %19, %21 : vector<8x16xf32>
      %c0_20 = arith.constant 0 : index
      %c0_21 = arith.constant 0 : index
      %23 = vector.load %arg8[%c0_20, %c0_21] : memref<8x16xf32, #tpu.memory_space<vmem>>, vector<8x16xf32>
      tpu.vector_store %arg8[%c0_20, %c0_21], %22 {strides = array<i32>} : memref<8x16xf32, #tpu.memory_space<vmem>>, vector<8x16xf32>,
    } else {
    }
    return
  }
  func.func @transform_0(%arg0: i32, %arg1: i32, %arg2: memref<1xi32, #tpu.memory_space<smem>>) -> (i32, i32) {
    %c0_i32 = arith.constant 0 : i32
    %c0_i32_0 = arith.constant 0 : i32
    return %arg0, %c0_i32 : i32, i32
  }
  func.func @transform_1(%arg0: i32, %arg1: i32, %arg2: memref<1xi32, #tpu.memory_space<smem>>) -> (i32, i32) {
    %c0_i32 = arith.constant 0 : i32
    %c0_i32_0 = arith.constant 0 : i32
    return %c0_i32, %arg1 : i32, i32
  }
  func.func @transform_2(%arg0: i32, %arg1: i32, %arg2: memref<1xi32, #tpu.memory_space<smem>>) -> (i32, i32) {
    %c0_i32 = arith.constant 0 : i32
    %c0_i32_0 = arith.constant 0 : i32
    return %c0_i32, %arg1 : i32, i32
  }
  func.func @transform_3(%arg0: i32, %arg1: i32, %arg2: memref<1xi32, #tpu.memory_space<smem>>) -> (i32, i32) {
    %c0_i32 = arith.constant 0 : i32
    %c0_i32_0 = arith.constant 0 : i32
    return %arg1, %c0_i32 : i32, i32
  }
  func.func @transform_4(%arg0: i32, %arg1: i32, %arg2: memref<1xi32, #tpu.memory_space<smem>>) -> (i32, i32) {
    %c0_i32 = arith.constant 0 : i32
    %c0_i32_0 = arith.constant 0 : i32
    %c0_i32_1 = arith.constant 0 : i32
    return %c0_i32, %c0_i32_0 : i32, i32
  }
  func.func @transform_5(%arg0: i32, %arg1: i32, %arg2: memref<1xi32, #tpu.memory_space<smem>>) -> (i32, i32) {
    %c0_i32 = arith.constant 0 : i32
    %c0_i32_0 = arith.constant 0 : i32
    return %arg0, %c0_i32 : i32, i32
  }
}

</mosaic_0001>

<bundles_post_ra>
// kernel: mlp_head.1
= control target key start
LH: loop header
LB: loop body
LE: loop exit
PB: predicated region body
PF: predicated region fallthrough
CT: control target
= control target key end

     0   :  { %s245_s0 = inlined_call_operand.<no memory space> [shape: s32[1], index: 0, kind: input, shape index: {}]   ;;  %s246_s1 = inlined_call_operand.vmem [shape: f32[8,32], index: 1, kind: input, shape index: {}]   ;;  %s247_s2 = inlined_call_operand.vmem [shape: f32[32,64], index: 2, kind: input, shape index: {}]   ;;  %s248_s3 = inlined_call_operand.vmem [shape: f32[1,64], index: 3, kind: input, shape index: {}]   ;;  %s249_s4 = inlined_call_operand.vmem [shape: f32[64,16], index: 4, kind: input, shape index: {}]   ;;  %s250_s5 = inlined_call_operand.vmem [shape: f32[1,16], index: 5, kind: input, shape index: {}]   ;;  %s251_s6 = inlined_call_operand.hbm [shape: f32[8,16], index: 6, kind: output, shape index: {}]  }
   0x1   :  { %v33_v0 = vld [vmem:[%s247_s2 + $0x18] sm:$0xff]  ;;  %v32_v1 = vld [vmem:[%s247_s2 + $0x10] sm:$0xff]  ;;  %v31_v3 = vld [vmem:[%s247_s2 + $0x8] sm:$0xff] }
   0x2   :  { %54 = vmatpush.msra.mxu0 %v33_v0  ;;  %v71_v2 = vld [vmem:[%s249_s4 + $0x38] sm:$0xff]  ;;  %v70_v4 = vld [vmem:[%s249_s4 + $0x30] sm:$0xff]  ;;  %v69_v5 = vld [vmem:[%s249_s4 + $0x28] sm:$0xff] }
   0x3   :  { %84 = vmatpush.msra.mxu1 %v71_v2  ;;  %v30_v6 = vld [vmem:[%s247_s2] sm:$0xff] }
   0x4   :  { %55 = vmatpush.msra.mxu0 %v32_v1 }
   0x5   :  { %85 = vmatpush.msra.mxu1 %v70_v4 }
   0x6   :  { %12 = vsyncpa [#allocation6], 0  ;;  %56 = vmatpush.msra.mxu0 %v31_v3  ;;  %v29_v7 = vld [vmem:[%s246_s1] sm:$0xff]  ;;  %vm38_vm0 = vcmask 261120   ;;  %v67_v9 = vld [vmem:[%s249_s4 + $0x18] sm:$0xff]  ;;  %vm27_vm1 = vcmask 130048  }
   0x7   :  { %v68_v8 = vld [vmem:[%s249_s4 + $0x20] sm:$0xff]  ;;  %86 = vmatpush.msra.mxu1 %v69_v5  ;;  %v66_v10 = vld [vmem:[%s249_s4 + $0x10] sm:$0xff]  ;;  %v65_v11 = vld [vmem:[%s249_s4 + $0x8] sm:$0xff]  ;;  %v157_v13 = vmov 0.0   ;;  %vm72_vm2 = vcmask 523264   ;;  %s158_s22 = smov [#allocation5]  }
   0x8   :  { %57 = vmatpush.msra.mxu0 %v30_v6  ;;  %v64_v12 = vld [vmem:[%s249_s4] sm:$0xff]  ;;  %28 = vst.msk [vmem:[#allocation2] sm:$0xff] %vm27_vm1, %v157_v13  ;;  %s114_s23 = sshll.u32 %s158_s22, 4  ;;  %s115_s23 = int_to_ptr.vmem [resolvable:$true] %s114_s23 }
   0x9   :  { %125 = vmatmul.msk.f32.vlgmr.msra.gmra.mxu0 %vm38_vm0, %v29_v7  ;;  %87 = vmatpush.msra.mxu1 %v68_v8  ;;  %v129_v14 = vld [vmem:[%s248_s3] ss:$0 sm:$0xff]  ;;  %s116_s3 = sshll.u32 %s251_s6, 4  ;;  %s117_s3 = int_to_ptr.hbm [resolvable:$true] %s116_s3 }
   0xa   :  { %v130_v21 = vld [vmem:[%s250_s5] ss:$0 sm:$0xff] }
   0xb   :  { %88 = vmatpush.msra.mxu1 %v67_v9 }
   0xd   :  { %89 = vmatpush.msra.mxu1 %v66_v10 }
   0xf   :  { %90 = vmatpush.msra.mxu1 %v65_v11  ;;  %v63_v18 = vld [vmem:[#allocation2] sm:$0xff] }
  0x11   :  { %91 = vmatpush.msra.mxu1 %v64_v12 }
  0x86   :  { %v59_v15 = vpop.f32.mrf.mxu0 }
  0x87   :  { %v60_v16 = vadd.f32 %v129_v14, %v59_v15 }
  0x89   :  { %v62_v17 = vmax.f32 %v60_v16, 0.0 }
  0x8b   :  { %126 = vmatmul.msk.f32.vlgmr.msra.gmra.mxu1 %vm72_vm2, %v62_v17 }
 0x108   :  { %v93_v19 = vpop.f32.mrf.mxu1 }
 0x109   :  { %v96_v20 = vadd.f32 %v93_v19, %v63_v18 }
 0x10b   :  { %98 = vst.msk [vmem:[#allocation2] sm:$0xff] %vm27_vm1, %v96_v20 }
 0x112   :  { %v102_v22 = vld [vmem:[#allocation2] sm:$0xff] }
 0x113   :  { %v107_v23 = vadd.f32 %v130_v21, %v102_v22 }
 0x115   :  { %108 = vst.msk [vmem:[#allocation5] sm:$0xff] %vm27_vm1, %v107_v23 }
 0x116   :  { %119 = dma.vmem_to_hbm [thread:$0]  %s115_s23, 128, %s117_s3, [#allocation6]  }
 0x117   :  { %155 = dma.done.wait [#allocation6], 128  }
 0x118   :  { %156 = vsyncadd [#allocation6], 4294967168 }
 0x119   :  { %124 = vsyncpa [#allocation6], 1 }

</bundles_post_ra>
